<compile_context>
chip_gen: v6e
topology: v6e:2x2x1
jax: 0.10.0
libtpu: 0.0.40
codegen_flags: <defaults>
</compile_context>

<pallas_src>
import math
from functools import partial

import jax
import jax.numpy as jnp
from jax.experimental import pallas as pl
from jax.experimental.pallas import tpu as pltpu


def _embed_kernel(tok_ref, planes_ref, out_ref, *, scale):
    """One grid step: gather T embedding rows via one-hot MXU matmuls.

    tok_ref:    (1, T, 1) int32  -- token ids for this chunk (ids on sublanes)
    planes_ref: (P, V, E)        -- table as P planes (bf16 hi[/lo]), VMEM-resident
    out_ref:    (T, E)           -- lane-dense output slab for this chunk
    """
    P, V, E = planes_ref.shape
    T = out_ref.shape[0]

    tok = tok_ref[0]                                    # (T, 1) int32
    tok = jnp.clip(tok, 0, V - 1)                       # bounds safety for bad/padded ids

    # One-hot over the vocabulary (vocab along lanes): onehot[t, v] = (tok[t] == v).
    # (Could be cached in a VMEM scratch across steps, but that requires per-core
    #  init under "parallel" semantics; kept per-step for simplicity.)
    iota_v = jax.lax.broadcasted_iota(jnp.int32, (T, V), 1)
    onehot = (iota_v == tok).astype(planes_ref.dtype)   # (T, V)

    # Gather as MXU matmuls: (T, V) @ (V, E) -> (T, E), f32 accumulate.
    # P == 1 (bf16 table) or P == 2 (f32 table split into bf16 hi/lo planes).
    acc = jnp.zeros((T, E), jnp.float32)
    for p in range(P):                                  # static, unrolled
        acc = acc + jnp.dot(onehot, planes_ref[p], preferred_element_type=jnp.float32)

    out_ref[...] = (acc * scale).astype(out_ref.dtype)


def _table_planes(emb_table):
    """Represent the table as MXU-friendly planes."""
    if emb_table.dtype == jnp.float32:
        hi = emb_table.astype(jnp.bfloat16)
        lo = (emb_table - hi.astype(jnp.float32)).astype(jnp.bfloat16)
        return jnp.stack([hi, lo], axis=0)              # (2, V, E) bf16
    # bf16 (or other narrow dtypes) go through directly as a single plane.
    return emb_table[None]                              # (1, V, E)


def token_embedding(tokens, emb_table, *, max_chunk=512):
    """Equivalent of TokenEmbedding.forward: emb_table[tokens] * sqrt(emb_size).

    tokens:    [seq_len, batch] integer ids
    emb_table: [vocab_size, emb_size]
    returns:   [seq_len, batch, emb_size]
    """
    L, B = tokens.shape
    V, E = emb_table.shape
    n = L * B
    out_dtype = emb_table.dtype
    scale = math.sqrt(E)

    planes = _table_planes(emb_table)
    P = planes.shape[0]
    plane_isz = jnp.dtype(planes.dtype).itemsize
    out_isz = jnp.dtype(out_dtype).itemsize
    table_bytes = P * V * E * plane_isz                  # single-buffered (pl.Buffered(1))

    # Per-generation VMEM budget with headroom (v7x 64 MiB/TC, v5e/v6e 128 MiB).
    try:
        vmem_cap = int(pltpu.get_tpu_info().vmem_capacity_bytes)
    except Exception:
        vmem_cap = 64 * 1024 * 1024
    vmem_limit = int(vmem_cap * 0.85)
    if vmem_cap <= 64 * 1024 * 1024:                     # v7x: smaller default chunk
        max_chunk = min(max_chunk, 256)

    # Tables that do not fit the VMEM budget: plain XLA gather for now.
    # TODO(synk): manual double-buffered HBM row-gather Pallas path for large V.
    if table_bytes + (8 << 20) > vmem_limit:
        flat = jnp.clip(tokens.reshape(n).astype(jnp.int32), 0, V - 1)
        return (jnp.take(emb_table, flat, axis=0) * scale).reshape(L, B, E).astype(out_dtype)

    # --- choose tokens-per-step T against the VMEM budget ----------------------
    sub = {4: 8, 2: 16, 1: 32}.get(out_isz, 8)           # sublane packing of out dtype
    # per-token cost: double-buffered (T,E) out block + (T,V) iota + (T,V) one-hot
    # + (T,E) f32 accumulator + token ids.
    per_row = 2 * E * out_isz + V * (4 + plane_isz) + E * 4 + 64
    budget = vmem_limit - table_bytes - (4 << 20)
    t_cap = max(int(budget // per_row), sub)
    t_cap = min(t_cap, max_chunk)

    if n <= t_cap:
        T = n                                            # single block == full dims; no padding
    else:
        t_max = max((t_cap // sub) * sub, sub)
        T = 0
        t = t_max
        while t >= sub:                                  # prefer a divisor of n: no ragged tail
            if n % t == 0:
                T = t
                break
            t -= sub
        if T == 0:                                       # ragged tail -> partial last block
            mxu = 256 if t_max >= 256 else (128 if t_max >= 128 else sub)
            T = max((t_max // mxu) * mxu, sub)

    n_chunks = pl.cdiv(n, T)

    flat = tokens.reshape(n).astype(jnp.int32)
    if n_chunks * T != n:
        flat = jnp.pad(flat, (0, n_chunks * T - n))      # pad token ids only, never the output
    tok_chunks = flat.reshape(n_chunks, T, 1)            # ids land on sublanes

    # Single-buffer the table (constant index_map => a second buffer is waste).
    table_spec_kwargs = {}
    if hasattr(pl, "Buffered"):
        table_spec_kwargs["pipeline_mode"] = pl.Buffered(1)
    table_spec = pl.BlockSpec((P, V, E), lambda i: (0, 0, 0), **table_spec_kwargs)

    # On v7x, "parallel" duplicates the resident table per TensorCore; only use it
    # for small tables.
    par = "parallel" if table_bytes <= (20 << 20) else "arbitrary"

    kernel = partial(_embed_kernel, scale=scale)

    out = pl.pallas_call(
        kernel,
        out_shape=jax.ShapeDtypeStruct((n, E), out_dtype),
        grid_spec=pltpu.PrefetchScalarGridSpec(
            num_scalar_prefetch=0,
            grid=(n_chunks,),
            in_specs=[
                pl.BlockSpec((1, T, 1), lambda i: (i, 0, 0)),   # token ids for this chunk
                table_spec,                                      # whole table, VMEM-resident
            ],
            # sublane/lane-dense output slab -> unmasked wide stores
            out_specs=pl.BlockSpec((T, E), lambda i: (i, 0)),
        ),
        compiler_params=pltpu.CompilerParams(
            dimension_semantics=(par,),
            vmem_limit_bytes=vmem_limit,
        ),
    )(tok_chunks, planes)

    return out.reshape(L, B, E)


if __name__ == "__main__":
    # Small, deterministic setup consistent with the module's forward.
    vocab_size = 32
    emb_size = 128
    seq_len = 8
    batch = 2

    key = jax.random.PRNGKey(0)
    k_emb, k_tok = jax.random.split(key)

    # nn.Embedding weight: (vocab_size, emb_size), init ~ N(0, 1)
    emb_table = jax.random.normal(k_emb, (vocab_size, emb_size), dtype=jnp.float32)
    tokens = jax.random.randint(k_tok, (seq_len, batch), 0, vocab_size, dtype=jnp.int32)

    out = token_embedding(tokens, emb_table)
    out = jax.block_until_ready(out)

    # Reference check (plain JAX gather). The bf16 hi/lo split keeps the result
    # within ~4e-6 relative of the exact f32 gather.
    ref = emb_table[tokens] * math.sqrt(emb_size)
    assert out.shape == (seq_len, batch, emb_size)
    assert jnp.allclose(out, ref, atol=1e-4, rtol=1e-5), "mismatch vs reference"

    print("KERNEL_OK")
</pallas_src>

<mosaic_0001>
module attributes {stable_mosaic.version = 11 : i64} {
  func.func @_embed_kernel(%arg0: i32, %arg1: memref<1x16x1xi32, #tpu.memory_space<vmem>>, %arg2: memref<2x32x128xbf16, #tpu.memory_space<vmem>>, %arg3: memref<16x128xf32, #tpu.memory_space<vmem>>) attributes {dimension_semantics = [#tpu.dimension_semantics<parallel>], iteration_bounds = array<i64: 1>, scalar_prefetch = 0 : i64, scratch_operands = 0 : i64, tpu.core_type = #tpu.core_type<tc>, window_params = [{transform_indices = @transform_0, window_bounds = array<i64: 1, 16, 1>}, {pipeline_mode = #tpu.pipeline_mode<synchronous>, transform_indices = @transform_1, window_bounds = array<i64: 2, 32, 128>}, {transform_indices = @transform_2, window_bounds = array<i64: 16, 128>}]} {
    %c0 = arith.constant 0 : index
    %c0_0 = arith.constant 0 : index
    %c0_1 = arith.constant 0 : index
    %0 = vector.load %arg1[%c0, %c0_0, %c0_1] : memref<1x16x1xi32, #tpu.memory_space<vmem>>, vector<1x16x1xi32>
    %1 = vector.shape_cast %0 : vector<1x16x1xi32> to vector<16x1xi32>
    %c0_i32 = arith.constant 0 : i32
    %c31_i32 = arith.constant 31 : i32
    %2 = vector.broadcast %c0_i32 : i32 to vector<16x1xi32>
    %3 = arith.maxsi %2, %1 : vector<16x1xi32>
    %4 = vector.broadcast %c31_i32 : i32 to vector<16x1xi32>
    %5 = arith.minsi %4, %3 : vector<16x1xi32>
    %6 = tpu.iota {dimensions = array<i32: 1>} : vector<16x32xi32>
    %7 = vector.broadcast %5 : vector<16x1xi32> to vector<16x32xi32>
    %8 = arith.cmpi eq, %6, %7 : vector<16x32xi32>
    %9 = arith.extui %8 : vector<16x32xi1> to vector<16x32xi32>
    %10 = arith.sitofp %9 : vector<16x32xi32> to vector<16x32xf32>
    %11 = arith.truncf %10 : vector<16x32xf32> to vector<16x32xbf16>
    %cst = arith.constant 0.000000e+00 : f32
    %12 = vector.broadcast %cst : f32 to vector<16x128xf32>
    %c0_2 = arith.constant 0 : index
    %c0_3 = arith.constant 0 : index
    %c0_4 = arith.constant 0 : index
    %13 = vector.load %arg2[%c0_2, %c0_3, %c0_4] : memref<2x32x128xbf16, #tpu.memory_space<vmem>>, vector<1x32x128xbf16>
    %14 = vector.shape_cast %13 : vector<1x32x128xbf16> to vector<32x128xbf16>
    %cst_5 = arith.constant dense<0.000000e+00> : vector<16x128xf32>
    %15 = tpu.matmul %11, %14, %cst_5 {dimension_numbers = #tpu.dot_dimension_numbers<[1], [0], [0], [1], [0, 0, 1, 1], [], []>} : vector<16x32xbf16>, vector<32x128xbf16>, vector<16x128xf32> -> vector<16x128xf32>
    %16 = arith.addf %12, %15 : vector<16x128xf32>
    %c1 = arith.constant 1 : index
    %c0_6 = arith.constant 0 : index
    %c0_7 = arith.constant 0 : index
    %17 = vector.load %arg2[%c1, %c0_6, %c0_7] : memref<2x32x128xbf16, #tpu.memory_space<vmem>>, vector<1x32x128xbf16>
    %18 = vector.shape_cast %17 : vector<1x32x128xbf16> to vector<32x128xbf16>
    %cst_8 = arith.constant dense<0.000000e+00> : vector<16x128xf32>
    %19 = tpu.matmul %11, %18, %cst_8 {dimension_numbers = #tpu.dot_dimension_numbers<[1], [0], [0], [1], [0, 0, 1, 1], [], []>} : vector<16x32xbf16>, vector<32x128xbf16>, vector<16x128xf32> -> vector<16x128xf32>
    %20 = arith.addf %16, %19 : vector<16x128xf32>
    %cst_9 = arith.constant 11.3137083 : f32
    %21 = vector.broadcast %cst_9 : f32 to vector<16x128xf32>
    %22 = arith.mulf %20, %21 : vector<16x128xf32>
    %c0_10 = arith.constant 0 : index
    %c0_11 = arith.constant 0 : index
    %23 = vector.load %arg3[%c0_10, %c0_11] : memref<16x128xf32, #tpu.memory_space<vmem>>, vector<16x128xf32>
    tpu.vector_store %arg3[%c0_10, %c0_11], %22 {strides = array<i32>} : memref<16x128xf32, #tpu.memory_space<vmem>>, vector<16x128xf32>,
    return
  }
  func.func @transform_0(%arg0: i32) -> (i32, i32, i32) {
    %c0_i32 = arith.constant 0 : i32
    %c0_i32_0 = arith.constant 0 : i32
    %c0_i32_1 = arith.constant 0 : i32
    return %arg0, %c0_i32, %c0_i32_0 : i32, i32, i32
  }
  func.func @transform_1(%arg0: i32) -> (i32, i32, i32) {
    %c0_i32 = arith.constant 0 : i32
    %c0_i32_0 = arith.constant 0 : i32
    %c0_i32_1 = arith.constant 0 : i32
    %c0_i32_2 = arith.constant 0 : i32
    return %c0_i32, %c0_i32_0, %c0_i32_1 : i32, i32, i32
  }
  func.func @transform_2(%arg0: i32) -> (i32, i32) {
    %c0_i32 = arith.constant 0 : i32
    %c0_i32_0 = arith.constant 0 : i32
    return %arg0, %c0_i32 : i32, i32
  }
}

</mosaic_0001>

<bundles_post_ra>
// kernel: tpu_custom_call.1
= control target key start
LH: loop header
LB: loop body
LE: loop exit
PB: predicated region body
PF: predicated region fallthrough
CT: control target
= control target key end

     0   :  { %7 = vsyncpa [#allocation3], 0  ;;  %s316_s0 = inlined_call_operand.vmem [shape: s32[1,16,1], index: 0, kind: input, shape index: {}]   ;;  %s317_s1 = inlined_call_operand.hbm [shape: bf16[2,32,128], index: 1, kind: input, shape index: {}]   ;;  %s318_s2 = inlined_call_operand.hbm [shape: f32[16,128], index: 2, kind: output, shape index: {}]  }
   0x1   :  { %8 = vsyncpa [#allocation4], 0  ;;  %s280_s9 = smov [#allocation2]  }
   0x2   :  { %s16_s10 = sshll.u32 %s280_s9, 4  ;;  %s17_s10 = int_to_ptr.vmem [resolvable:$true] %s16_s10 }
   0x3   :  { %s244_s11 = scalar_lea.vmem %s17_s10, 512  ;;  %p249_p1 = scmp.lt.s32.totalorder %s17_s10, %s17_s10 }
   0x4   :  { %p245_p0 = scmp.ne.s32.totalorder %s17_s10, %s244_s11  ;;  %p250_p2 = scmp.lt.s32.totalorder %s244_s11, %s244_s11 }
   0x6   :  { %p251_p3 = por %p250_p2, %p249_p1 }
   0x8   :  { %p252_p4 = pnand %p251_p3, %p245_p0 }
   0xa   :  { %255 = shalt.err (!%p252_p4)
}
   0xb   :  { %s281_s12 = smov 64   ;;  %s282_s13 = smov 4  }
   0xc   :  { %22 = dma.hbm_to_vmem [thread:$0]  %s317_s1, 512, %s17_s10, [#allocation3], %s281_s12, %s281_s12, %s282_s13  }
   0xd   :  { %276 = dma.done.wait [#allocation3], 512  }
   0xe   :  { %277 = vsyncadd [#allocation3], 4294966784  ;;  %v283_v0 = vmov 0   ;;  %v284_v1 = vmov 0.0   ;;  %v27_v2 = vld [vmem:[%s316_s0] sm:$0xff]  ;;  %v28_v3 = vld [vmem:[%s316_s0 + $0x8] sm:$0xff]  ;;  %v37_v12 = vlaneseq }
   0xf   :  { %231 = vset.pattern.permute.xlu0 %v283_v0  ;;  %206 = vmatprep.subr.bf16.mxu0 %v284_v1  ;;  %vm29_vm0 = vcmp.gt.s32.totalorder %v27_v2, 0  ;;  %vm31_vm1 = vcmp.gt.s32.totalorder %v28_v3, 0  ;;  %v232_v4 = vld [vmem:[#allocation2 + $0x18] sm:$0xff]   ;;  %v233_v5 = vld [vmem:[#allocation2 + $0x8] sm:$0xff]   ;;  %v234_v9 = vld [vmem:[#allocation2 + $0x10] sm:$0xff]   ;;  %vm285_vm4 = vmmov 0  }
  0x10   :  { %214 = vmatprep.subr.bf16.mxu1 %v284_v1  ;;  %v30_v6 = vsel %vm29_vm0, %v27_v2, 0  ;;  %v32_v7 = vsel %vm31_vm1, %v28_v3, 0  ;;  %207 = vmatpush3.bf16.msra.mxu0 %v232_v4  ;;  %v235_v10 = vld [vmem:[#allocation2] sm:$0xff]   ;;  %v38_v13 = vand.u32 127, %v37_v12  ;;  %vm73_vm7 = vcmask 261120   ;;  %s286_s0 = smov [#allocation5]  }
  0x11   :  { %vm33_vm2 = vcmp.lt.s32.totalorder %v30_v6, 31  ;;  %vm35_vm3 = vcmp.lt.s32.totalorder %v32_v7, 31  ;;  %215 = vmatpush3.bf16.msra.mxu1 %v233_v5  ;;  %208 = vmatprep.subr.bf16.mxu0 %v284_v1  ;;  %s180_s1 = sshll.u32 %s286_s0, 4  ;;  %s181_s1 = int_to_ptr.vmem [resolvable:$true] %s180_s1 }
  0x12   :  { %v34_v8 = vsel %vm33_vm2, %v30_v6, 31  ;;  %216 = vmatprep.subr.bf16.mxu1 %v284_v1  ;;  %v36_v11 = vsel %vm35_vm3, %v32_v7, 31  ;;  %210 = vmatprep.mubr.msk.bf16.mxu0 %vm285_vm4, %v284_v1  ;;  %s256_s20 = scalar_lea.vmem %s181_s1, 256  ;;  %p261_p6 = scmp.lt.s32.totalorder %s181_s1, %s181_s1 }
  0x13   :  { %40 = vperm.xlu0 %231, %v34_v8   ;;  %218 = vmatprep.mubr.msk.bf16.mxu1 %vm285_vm4, %v284_v1  ;;  %p257_p5 = scmp.ne.s32.totalorder %s181_s1, %s256_s20  ;;  %p262_p7 = scmp.lt.s32.totalorder %s256_s20, %s256_s20 }
  0x14   :  { %209 = vmatpush3.bf16.msra.mxu0 %v234_v9 }
  0x15   :  { %217 = vmatpush3.bf16.msra.mxu1 %v235_v10  ;;  %p263_p8 = por %p262_p7, %p261_p6 }
  0x17   :  { %43 = vperm.xlu0 %231, %v36_v11   ;;  %p264_p9 = pnand %p263_p8, %p257_p5 }
  0x8e   :  { %v41_v14 = vpop.permute.xlu0 %40 }
  0x8f   :  { %vm45_vm5 = vcmp.eq.s32.totalorder %v38_v13, %v41_v14 }
  0x90   :  { %v192_v16 = vsel %vm45_vm5, 1.0, %v284_v1 }
  0x92   :  { %v44_v15 = vpop.permute.xlu0 %43 }
  0x93   :  { %vm46_vm6 = vcmp.eq.s32.totalorder %v38_v13, %v44_v15 }
  0x94   :  { %v193_v17 = vsel %vm46_vm6, 1.0, %v284_v1 }
  0x95   :  { %v51_v18 = vpack.c.bf16 %v193_v17, %v192_v16 }
  0x97   :  { %211 = vmatmul.mubr.msk.bf16.vlgmr.msra.gmra.mxu0 %vm73_vm7, %v51_v18  ;;  %219 = vmatmul.mubr.msk.bf16.vlgmr.msra.gmra.mxu1 %vm73_vm7, %v51_v18 }
 0x157   :  { %v111_v19 = vpop.f32.mrf.mxu0  ;;  %v164_v20 = vpop.f32.mrf.mxu1 }
 0x158   :  { %v165_v21 = vadd.f32 %v164_v20, %v111_v19 }
 0x159   :  { %v212_v22 = vpop.f32.mrf.mxu0  ;;  %v220_v23 = vpop.f32.mrf.mxu1 }
 0x15a   :  { %v171_v24 = vmul.f32 11.313708, %v165_v21 }
 0x15b   :  { %v114_v25 = vpop.f32.mrf.mxu0  ;;  %v167_v26 = vpop.f32.mrf.mxu1 }
 0x15c   :  { %173 = vst [vmem:[#allocation5] sm:$0xff] %v171_v24  ;;  %v168_v27 = vadd.f32 %v167_v26, %v114_v25 }
 0x15d   :  { %v213_v28 = vpop.f32.mrf.mxu0  ;;  %v221_v29 = vpop.f32.mrf.mxu1 }
 0x15e   :  { %v172_v30 = vmul.f32 11.313708, %v168_v27 }
 0x160   :  { %174 = vst [vmem:[#allocation5 + $0x8] sm:$0xff] %v172_v30 }
 0x161   :  { %267 = shalt.err (!%p264_p9)
}
 0x162   :  { %s287_s21 = smov 128   ;;  %s288_s22 = smov 8  }
 0x163   :  { %186 = dma.vmem_to_hbm [thread:$0]  %s181_s1, 256, %s318_s2, [#allocation4], %s287_s21, %s287_s21, %s288_s22  }
 0x164   :  { %278 = dma.done.wait [#allocation4], 256  }
 0x165   :  { %279 = vsyncadd [#allocation4], 4294967040 }
 0x166   :  { %190 = vsyncpa [#allocation3], 1 }
 0x167   :  { %191 = vsyncpa [#allocation4], 1 }

</bundles_post_ra>
